<compile_context>
chip_gen: v7x
topology: tpu7x:2x2x1
jax: 0.10.0
libtpu: 0.0.40
codegen_flags: <defaults>
</compile_context>

<pallas_src>
import functools

import jax
import jax.numpy as jnp
from jax import lax
from jax.experimental import pallas as pl
from jax.experimental.pallas import tpu as pltpu


_LANE = 128
_VMEM_LIMIT_BYTES = 32 * 1024 * 1024  # safe on v5e/v6e (128 MiB) and v7x (64 MiB)


def _round_up(x, m):
    return ((x + m - 1) // m) * m


def _pick_lane_tile(dim):
    """Pick a lane-dense (128-multiple) tile <= 512 and the padded extent."""
    padded = _round_up(dim, _LANE)
    if padded <= 512:
        return padded, padded
    for t in (512, 384, 256):           # prefer a tile that divides exactly
        if padded % t == 0:
            return t, padded
    return 512, _round_up(padded, 512)  # fall back: pad K/N up to a 512-multiple


# ---------------------------------------------------------------------------
# Kernels.  Weight stays in PyTorch's [out, in] layout; the MXU matmul
# contracts the last dim of both operands (x @ W^T) via lax.dot_general, so no
# transpose is ever materialized (neither in HBM nor in the kernel).
# ---------------------------------------------------------------------------


def _mlp_kernel_fused(x_ref, w_ref, b_ref, o_ref):
    """Single-K-block kernel: one MXU matmul + bias (VPU) + tanh (EUP)."""
    acc = lax.dot_general(
        x_ref[...], w_ref[...],
        dimension_numbers=(((1,), (1,)), ((), ())),
        preferred_element_type=jnp.float32,
    )
    o_ref[...] = jnp.tanh(acc + b_ref[...]).astype(o_ref.dtype)


def _mlp_kernel_kgrid(x_ref, w_ref, b_ref, o_ref):
    """K-reduction kernel: accumulate straight into the resident f32 o_ref."""
    k = pl.program_id(2)

    @pl.when(k == 0)
    def _():
        o_ref[...] = jnp.zeros_like(o_ref)

    o_ref[...] += lax.dot_general(
        x_ref[...], w_ref[...],
        dimension_numbers=(((1,), (1,)), ((), ())),
        preferred_element_type=jnp.float32,
    )

    @pl.when(k == pl.num_programs(2) - 1)
    def _():
        o_ref[...] = jnp.tanh(o_ref[...] + b_ref[...])


# ---------------------------------------------------------------------------
# Wrapper: everything (cast, pad, kernel, un-pad) inside one jit.
# ---------------------------------------------------------------------------


@functools.partial(jax.jit, static_argnames=("compute_dtype",))
def mlp_layer(features, weight, bias, *, compute_dtype=jnp.bfloat16):
    """tanh(features @ weight.T + bias); weight in PyTorch [out, in] layout."""
    B, K = features.shape
    N, K2 = weight.shape
    assert K2 == K and bias.shape == (N,)

    in_dtype = jnp.dtype(compute_dtype)
    # bf16 packs 2 rows per sublane -> min sublane tile is 16; f32 is 8.
    sub = 16 if in_dtype.itemsize < 4 else 8

    tile_b = min(512, _round_up(B, sub))
    tile_k, Kp = _pick_lane_tile(K)
    tile_n, Np = _pick_lane_tile(N)
    Bp = _round_up(B, tile_b)

    # v7x: 2 TensorCores shard the "parallel" grid axes.  If the grid would be
    # 1x1(xK), split N so both cores get work.
    if Bp == tile_b and Np == tile_n and Np >= 256:
        half = Np // 2
        tile_n = half if half % _LANE == 0 else _LANE

    # Zero-padding the contraction dim is exact; padded rows/cols are sliced
    # away below.  Only the MXU inputs are cast; accumulate/bias/tanh stay f32.
    x_p = jnp.pad(features, ((0, Bp - B), (0, Kp - K))).astype(in_dtype)
    w_p = jnp.pad(weight, ((0, Np - N), (0, Kp - K))).astype(in_dtype)
    b_p = jnp.pad(bias, (0, Np - N)).reshape(1, Np).astype(jnp.float32)

    out_shape = jax.ShapeDtypeStruct((Bp, Np), jnp.float32)

    if Bp == tile_b and Np == tile_n and Kp == tile_k:
        # Whole problem is one VMEM-resident block: no grid, no pipeline.
        out_p = pl.pallas_call(_mlp_kernel_fused, out_shape=out_shape)(x_p, w_p, b_p)
    elif Kp == tile_k:
        # Single K block: fused matmul+bias+tanh over a 2-D parallel grid.
        grid = (Bp // tile_b, Np // tile_n)
        out_p = pl.pallas_call(
            _mlp_kernel_fused,
            out_shape=out_shape,
            grid_spec=pltpu.PrefetchScalarGridSpec(
                num_scalar_prefetch=0,
                grid=grid,
                in_specs=[
                    pl.BlockSpec((tile_b, tile_k), lambda i, j: (i, 0)),  # x
                    pl.BlockSpec((tile_n, tile_k), lambda i, j: (j, 0)),  # W [out,in]
                    pl.BlockSpec((1, tile_n), lambda i, j: (0, j)),       # bias
                ],
                out_specs=pl.BlockSpec((tile_b, tile_n), lambda i, j: (i, j)),
            ),
            compiler_params=pltpu.CompilerParams(
                dimension_semantics=("parallel", "parallel"),
                vmem_limit_bytes=_VMEM_LIMIT_BYTES,
            ),
        )(x_p, w_p, b_p)
    else:
        # K-reduction grid (K last, "arbitrary").  Output block stays resident
        # across K, so accumulate directly into the f32 o_ref (no scratch).
        grid = (Bp // tile_b, Np // tile_n, Kp // tile_k)
        # TODO(synk): if profiling shows the weight DMA still exposed (small-B,
        # weight-BW-bound regime), add pipeline_mode=pl.Buffered(3) to the W spec.
        out_p = pl.pallas_call(
            _mlp_kernel_kgrid,
            out_shape=out_shape,
            grid_spec=pltpu.PrefetchScalarGridSpec(
                num_scalar_prefetch=0,
                grid=grid,
                in_specs=[
                    pl.BlockSpec((tile_b, tile_k), lambda i, j, k: (i, k)),  # x
                    pl.BlockSpec((tile_n, tile_k), lambda i, j, k: (j, k)),  # W [out,in]
                    pl.BlockSpec((1, tile_n), lambda i, j, k: (0, j)),       # bias
                ],
                out_specs=pl.BlockSpec((tile_b, tile_n), lambda i, j, k: (i, j)),
            ),
            compiler_params=pltpu.CompilerParams(
                dimension_semantics=("parallel", "parallel", "arbitrary"),
                vmem_limit_bytes=_VMEM_LIMIT_BYTES,
            ),
        )(x_p, w_p, b_p)

    return out_p[:B, :N]


if __name__ == "__main__":
    key = jax.random.PRNGKey(0)

    def make_inputs(k, B, H, w_scale=0.05):
        kx, kw, kb = jax.random.split(k, 3)
        features = jax.random.normal(kx, (B, H), dtype=jnp.float32)
        weight = jax.random.normal(kw, (H, H), dtype=jnp.float32) * w_scale  # [out,in]
        bias = jax.random.normal(kb, (H,), dtype=jnp.float32) * 0.01
        return features, weight, bias

    # --- Shipped toy shape (single-block, no-grid path): B=8, H=32 ---
    f0, w0, b0 = make_inputs(key, 8, 32)
    ref0 = jnp.tanh(f0 @ w0.T + b0)

    # Exact-precision path: matches the PyTorch module within 1e-5.
    out0_f32 = jax.block_until_ready(
        mlp_layer(f0, w0, b0, compute_dtype=jnp.float32))
    assert out0_f32.shape == (8, 32)
    assert jnp.allclose(out0_f32, ref0, atol=1e-5, rtol=1e-5)

    # Fast path (default): bf16 MXU inputs, f32 accumulate.
    out0_bf16 = jax.block_until_ready(mlp_layer(f0, w0, b0))
    assert out0_bf16.shape == (8, 32)
    assert jnp.allclose(out0_bf16, ref0, atol=2e-2, rtol=2e-2)

    # --- 2-D parallel grid path (single K block, split N): B=8, H=256 ---
    k1 = jax.random.fold_in(key, 1)
    f1, w1, b1 = make_inputs(k1, 8, 256)
    ref1 = jnp.tanh(f1 @ w1.T + b1)
    out1 = jax.block_until_ready(mlp_layer(f1, w1, b1))
    assert out1.shape == (8, 256)
    assert jnp.allclose(out1, ref1, atol=2e-2, rtol=2e-2)

    # --- K-reduction grid path (accumulate into o_ref): B=24, H=768 ---
    k2 = jax.random.fold_in(key, 2)
    f2, w2, b2 = make_inputs(k2, 24, 768)
    ref2 = jnp.tanh(f2 @ w2.T + b2)
    out2 = jax.block_until_ready(mlp_layer(f2, w2, b2))
    assert out2.shape == (24, 768)
    assert jnp.allclose(out2, ref2, atol=2e-2, rtol=2e-2)

    print("KERNEL_OK")
</pallas_src>

<mosaic_0001>
module attributes {stable_mosaic.version = 11 : i64} {
  func.func @_mlp_kernel_fused(%arg0: memref<8x128xf32, #tpu.memory_space<vmem>>, %arg1: memref<128x128xf32, #tpu.memory_space<vmem>>, %arg2: memref<1x128xf32, #tpu.memory_space<vmem>>, %arg3: memref<8x128xf32, #tpu.memory_space<vmem>>) attributes {dimension_semantics = [], scalar_prefetch = 0 : i64, scratch_operands = 0 : i64, tpu.core_type = #tpu.core_type<tc>} {
    %c0 = arith.constant 0 : index
    %c0_0 = arith.constant 0 : index
    %0 = vector.load %arg0[%c0, %c0_0] : memref<8x128xf32, #tpu.memory_space<vmem>>, vector<8x128xf32>
    %c0_1 = arith.constant 0 : index
    %c0_2 = arith.constant 0 : index
    %1 = vector.load %arg1[%c0_1, %c0_2] : memref<128x128xf32, #tpu.memory_space<vmem>>, vector<128x128xf32>
    %cst = arith.constant dense<0.000000e+00> : vector<8x128xf32>
    %2 = tpu.matmul %0, %1, %cst {dimension_numbers = #tpu.dot_dimension_numbers<[1], [1], [0], [0], [0, 0, 1, 0], [], []>} : vector<8x128xf32>, vector<128x128xf32>, vector<8x128xf32> -> vector<8x128xf32>
    %c0_3 = arith.constant 0 : index
    %c0_4 = arith.constant 0 : index
    %3 = vector.load %arg2[%c0_3, %c0_4] : memref<1x128xf32, #tpu.memory_space<vmem>>, vector<1x128xf32>
    %4 = vector.broadcast %3 : vector<1x128xf32> to vector<8x128xf32>
    %5 = arith.addf %2, %4 : vector<8x128xf32>
    %6 = math.tanh %5 : vector<8x128xf32>
    %c0_5 = arith.constant 0 : index
    %c0_6 = arith.constant 0 : index
    %7 = vector.load %arg3[%c0_5, %c0_6] : memref<8x128xf32, #tpu.memory_space<vmem>>, vector<8x128xf32>
    tpu.vector_store %arg3[%c0_5, %c0_6], %6 {strides = array<i32>} : memref<8x128xf32, #tpu.memory_space<vmem>>, vector<8x128xf32>,
    return
  }
}

</mosaic_0001>

<bundles_post_ra>
// kernel: mlp_layer.1
= control target key start
LH: loop header
LB: loop body
LE: loop exit
PB: predicated region body
PF: predicated region fallthrough
CT: control target
= control target key end

     0   :  { %v232_v2 = vmov 0.0|0.0   ;;  %vm233_vm0 = vmmov 0   ;;  %v234_v4 = vmov 0.0   ;;  %s322_s0 = inlined_call_operand.vmem [shape: f32[8,128], index: 0, kind: input, shape index: {}]   ;;  %s323_s1 = inlined_call_operand.vmem [shape: f32[128,128], index: 1, kind: input, shape index: {}]   ;;  %s324_s2 = inlined_call_operand.vmem [shape: f32[1,128], index: 2, kind: input, shape index: {}]   ;;  %s325_s3 = inlined_call_operand.hbm [shape: f32[8,128], index: 3, kind: output, shape index: {}]  }
   0x1   :  { %v16_v0 = vld [vmem:[%s323_s1] sm:$0xff]  ;;  %v17_v1 = vld [vmem:[%s323_s1 + $0x8] sm:$0xff]  ;;  %178 = vmatprep.subr.bf16.mxu0 %v232_v2  ;;  %175 = vmatprep.mubr.msk.f32.mxu0 %vm233_vm0, %v234_v4  ;;  %v18_v5 = vld [vmem:[%s323_s1 + $0x10] sm:$0xff] }
   0x2   :  { %v179_v3 = vpack.c.bf16 %v17_v1, %v16_v0  ;;  %v19_v6 = vld [vmem:[%s323_s1 + $0x18] sm:$0xff] }
   0x4   :  { %180 = vmatpush3.bf16.xpose.msra.mxu0 %v179_v3 }
   0x5   :  { %181 = vmatprep.subr.bf16.mxu0 %v232_v2 }
   0x6   :  { %8 = vsyncpa [#allocation3], 0  ;;  %v182_v7 = vpack.c.bf16 %v19_v6, %v18_v5  ;;  %v20_v8 = vld [vmem:[%s323_s1 + $0x20] sm:$0xff]  ;;  %v21_v9 = vld [vmem:[%s323_s1 + $0x28] sm:$0xff]  ;;  %s235_s21 = smov [#allocation2]  }
   0x7   :  { %v185_v10 = vpack.c.bf16 %v21_v9, %v20_v8  ;;  %v22_v11 = vld [vmem:[%s323_s1 + $0x30] sm:$0xff]  ;;  %v23_v12 = vld [vmem:[%s323_s1 + $0x38] sm:$0xff]  ;;  %v24_v14 = vld [vmem:[%s323_s1 + $0x40] sm:$0xff]  ;;  %s117_s22 = sshll.u32 %s235_s21, 4  ;;  %s118_s22 = int_to_ptr.vmem [resolvable:$true] %s117_s22 }
   0x8   :  { %v188_v13 = vpack.c.bf16 %v23_v12, %v22_v11  ;;  %v25_v15 = vld [vmem:[%s323_s1 + $0x48] sm:$0xff]  ;;  %v26_v17 = vld [vmem:[%s323_s1 + $0x50] sm:$0xff]  ;;  %v27_v18 = vld [vmem:[%s323_s1 + $0x58] sm:$0xff]  ;;  %p213_p1 = scmp.lt.s32.totalorder %s118_s22, %s118_s22 }
   0x9   :  { %v191_v16 = vpack.c.bf16 %v25_v15, %v24_v14  ;;  %v194_v19 = vpack.c.bf16 %v27_v18, %v26_v17  ;;  %v28_v20 = vld [vmem:[%s323_s1 + $0x60] sm:$0xff]  ;;  %v29_v21 = vld [vmem:[%s323_s1 + $0x68] sm:$0xff]  ;;  %v30_v23 = vld [vmem:[%s323_s1 + $0x70] sm:$0xff] }
   0xa   :  { %v197_v22 = vpack.c.bf16 %v29_v21, %v28_v20  ;;  %v31_v24 = vld [vmem:[%s323_s1 + $0x78] sm:$0xff]  ;;  %v15_v26 = vld [vmem:[%s322_s0] sm:$0xff]  ;;  %s208_s1 = scalar_lea.vmem %s118_s22, 128 }
   0xb   :  { %v200_v25 = vpack.c.bf16 %v31_v24, %v30_v23  ;;  %v125_v27 = vld [vmem:[%s324_s2] ss:$0 sm:$0xff]  ;;  %p209_p0 = scmp.ne.s32.totalorder %s118_s22, %s208_s1  ;;  %p214_p2 = scmp.lt.s32.totalorder %s208_s1, %s208_s1 }
   0xc   :  { %183 = vmatpush3.bf16.xpose.msra.mxu0 %v182_v7 }
   0xd   :  { %184 = vmatprep.subr.bf16.mxu0 %v232_v2  ;;  %p215_p3 = por %p214_p2, %p213_p1 }
   0xf   :  { %p216_p4 = pnand %p215_p3, %p209_p0 }
  0x14   :  { %186 = vmatpush3.bf16.xpose.msra.mxu0 %v185_v10 }
  0x15   :  { %187 = vmatprep.subr.bf16.mxu0 %v232_v2 }
  0x1c   :  { %189 = vmatpush3.bf16.xpose.msra.mxu0 %v188_v13 }
  0x1d   :  { %190 = vmatprep.subr.bf16.mxu0 %v232_v2 }
  0x24   :  { %192 = vmatpush3.bf16.xpose.msra.mxu0 %v191_v16 }
  0x25   :  { %193 = vmatprep.subr.bf16.mxu0 %v232_v2 }
  0x2c   :  { %195 = vmatpush3.bf16.xpose.msra.mxu0 %v194_v19 }
  0x2d   :  { %196 = vmatprep.subr.bf16.mxu0 %v232_v2 }
  0x34   :  { %198 = vmatpush3.bf16.xpose.msra.mxu0 %v197_v22 }
  0x35   :  { %199 = vmatprep.subr.bf16.mxu0 %v232_v2 }
  0x3c   :  { %201 = vmatpush3.bf16.xpose.msra.mxu0 %v200_v25 }
  0x43   :  { %176 = vmatmul.mubr.f32.vlgmr.msra.gmra.mrb[0].mxu0 %v15_v26 }
 0x116   :  { %v105_v28 = vpop.f32.mrb[0].mxu0 }
 0x117   :  { %v106_v29 = vadd.f32 %v125_v27, %v105_v28  ;;  %v177_v30 = vpop.f32.mrb[1].mxu0 }
 0x119   :  { %206 = vtanh.f32 %v106_v29 }
 0x123   :  { %v207_v31 = vpop.eup %206 }
 0x124   :  { %110 = vst [vmem:[#allocation2] sm:$0xff] %v207_v31 }
 0x125   :  { %219 = shalt.err (!%p216_p4)
}
 0x126   :  { %s220_s2 = scalar_lea.hbm %s325_s3, 128 }
 0x127   :  { %p221_p5 = scmp.ne.s32.totalorder %s325_s3, %s220_s2  ;;  %p224_p6 = scmp.lt.u32.totalorder %s220_s2, %s325_s3 }
 0x129   :  { %p226_p7 = pnand %p224_p6, %p221_p5 }
 0x12b   :  { %229 = shalt.err (!%p226_p7)
}
 0x12c   :  { %120 = dma.vmem_to_hbm [thread:$0]  %s118_s22, 128, %s325_s3, [#allocation3]  }
 0x12d   :  { %230 = dma.done.wait [#allocation3], 128  }
 0x12e   :  { %231 = vsyncadd [#allocation3], 4294967168 }
 0x12f   :  { %124 = vsyncpa [#allocation3], 1 }

</bundles_post_ra>
